<compile_context>
chip_gen: v7x
topology: tpu7x:2x2x1
jax: 0.10.0
libtpu: 0.0.40
codegen_flags: <defaults>
</compile_context>

<pallas_src>
import functools

import jax
import jax.numpy as jnp
from jax.experimental import pallas as pl
from jax.experimental.pallas import tpu as pltpu


# ------------------------------- constants ----------------------------------

_NODE_PAD = 256                  # node-dim padding granularity (decoupled from tile)
_LANE = 128                      # lane width: pad feature/hidden/class dims to this
_NEG_INF = -1e9                  # mask value for padded class columns
_RESIDENT_SUPPORT_BYTES = 12 * 1024 * 1024   # keep support VMEM-resident below this
_VMEM_CAP = 32 * 1024 * 1024     # v7x scoped-VMEM ceiling (64 MiB physical)


def _round_up(x, m):
    return (x + m - 1) // m * m


def _pick_tile(np_):
    # Largest tile in {512, 256} that divides the padded node count.
    for t in (512, 256):
        if np_ % t == 0:
            return t
    return 256


def _pad2(a, rows, cols):
    return jnp.pad(a, ((0, rows - a.shape[0]), (0, cols - a.shape[1])))


def _pad1(a, n):
    return jnp.pad(a, (0, n - a.shape[0]))


# ----------------------------- Pallas kernels --------------------------------


def support_kernel(x_ref, w_ref, o_ref):
    # support = x @ W  (row-tiled; K is small so W lives whole in VMEM)
    o_ref[...] = jnp.dot(
        x_ref[...], w_ref[...], preferred_element_type=jnp.float32
    ).astype(o_ref.dtype)


def aggregate_kernel(adj_ref, s_ref, b_ref, o_ref, acc_ref, *, tk, resident):
    # out = relu(adj @ support + b), reduction over node tiles (grid axis 1).
    k = pl.program_id(1)

    @pl.when(k == 0)
    def _():
        acc_ref[...] = jnp.zeros_like(acc_ref)

    # adj is stored int8 (0/1 exact); cast to bf16 on the VPU for the MXU.
    adj_blk = adj_ref[...].astype(jnp.bfloat16)
    if resident:
        # support is VMEM-resident: slice the current reduction tile in place.
        start = pl.multiple_of(k * tk, tk)
        s_blk = s_ref[pl.ds(start, tk), :]
    else:
        s_blk = s_ref[...]

    acc_ref[...] += jnp.dot(adj_blk, s_blk, preferred_element_type=jnp.float32)

    @pl.when(k == pl.num_programs(1) - 1)
    def _():
        # bias-add + ReLU in f32 on the accumulator; cast only at the store.
        o_ref[...] = jnp.maximum(acc_ref[...] + b_ref[...], 0.0).astype(o_ref.dtype)


def pool_head_kernel(pool_ref, h_ref, wc_ref, bc_ref, o_ref, acc_ref):
    # pooled = mean-pool(h2) accumulated over node tiles; epilogue = classifier
    # + log-softmax on the last reduction step (all f32).
    k = pl.program_id(0)

    @pl.when(k == 0)
    def _():
        acc_ref[...] = jnp.zeros_like(acc_ref)

    acc_ref[...] += jnp.dot(
        pool_ref[...], h_ref[...], preferred_element_type=jnp.float32
    )

    @pl.when(k == pl.num_programs(0) - 1)
    def _():
        logits = jnp.dot(
            acc_ref[...], wc_ref[...], preferred_element_type=jnp.float32
        )
        logits = logits + bc_ref[...]  # padded classes carry -1e9 in bc
        m = jnp.max(logits, axis=-1, keepdims=True)
        shifted = logits - m
        lse = jnp.log(jnp.sum(jnp.exp(shifted), axis=-1, keepdims=True))
        o_ref[...] = shifted - lse


# ------------------------------ Pallas wrappers -------------------------------


def support_matmul(x, w):
    """(Np, Kp) bf16 @ (Kp, Hp) bf16 -> (Np, Hp) bf16, row-tiled."""
    np_, kp = x.shape
    hp = w.shape[1]
    tm = _pick_tile(np_)
    flops = 2 * np_ * kp * hp
    bytes_accessed = np_ * kp * 2 + kp * hp * 2 + np_ * hp * 2
    return pl.pallas_call(
        support_kernel,
        out_shape=jax.ShapeDtypeStruct((np_, hp), jnp.bfloat16),
        grid=(np_ // tm,),
        in_specs=[
            pl.BlockSpec((tm, kp), lambda i: (i, 0)),
            pl.BlockSpec((kp, hp), lambda i: (0, 0)),
        ],
        out_specs=pl.BlockSpec((tm, hp), lambda i: (i, 0)),
        compiler_params=pltpu.CompilerParams(dimension_semantics=("parallel",)),
        cost_estimate=pl.CostEstimate(
            flops=flops, transcendentals=0, bytes_accessed=bytes_accessed
        ),
    )(x, w)


def aggregate_relu(adj_i8, support, bias):
    """relu(adj @ support + bias): tiled int8 adj, VMEM-resident support,
    f32 VMEM accumulator."""
    np_ = adj_i8.shape[0]
    hp = support.shape[1]
    tm = tk = _pick_tile(np_)
    grid = (np_ // tm, np_ // tk)

    # Keep the whole support matrix resident in VMEM when it fits the budget
    # (v7x: 64 MiB physical / 32 MiB scoped); otherwise tile it per k-step.
    resident = np_ * hp * 2 <= _RESIDENT_SUPPORT_BYTES
    if resident:
        s_spec = pl.BlockSpec((np_, hp), lambda i, k: (0, 0))
        support_bytes = np_ * hp * 2
        support_vmem = np_ * hp * 2
    else:
        s_spec = pl.BlockSpec((tk, hp), lambda i, k: (k, 0))
        support_bytes = np_ * hp * 2 * (np_ // tm)
        support_vmem = 2 * tk * hp * 2

    flops = 2 * np_ * np_ * hp
    bytes_accessed = (
        np_ * np_ * 1          # adj (int8), read once
        + support_bytes        # support (bf16)
        + np_ * hp * 2         # output (bf16)
    )

    # Explicit VMEM budget: footprint + headroom, capped for v7x's 32 MiB scope.
    footprint = (
        2 * tm * tk * 1        # adj double-buffer (int8)
        + support_vmem         # support (resident or double-buffered tile)
        + 2 * tm * hp * 2      # output double-buffer (bf16)
        + tm * hp * 4          # f32 accumulator
        + 2 * hp * 4           # bias
    )
    vmem_limit = int(min(max(2 * footprint, 16 * 1024 * 1024), _VMEM_CAP))

    kernel = functools.partial(aggregate_kernel, tk=tk, resident=resident)
    return pl.pallas_call(
        kernel,
        out_shape=jax.ShapeDtypeStruct((np_, hp), jnp.bfloat16),
        grid_spec=pltpu.PrefetchScalarGridSpec(
            num_scalar_prefetch=0,
            grid=grid,
            in_specs=[
                pl.BlockSpec((tm, tk), lambda i, k: (i, k)),
                s_spec,
                pl.BlockSpec((1, hp), lambda i, k: (0, 0)),
            ],
            out_specs=pl.BlockSpec((tm, hp), lambda i, k: (i, 0)),
            scratch_shapes=[pltpu.VMEM((tm, hp), jnp.float32)],
        ),
        compiler_params=pltpu.CompilerParams(
            dimension_semantics=("parallel", "arbitrary"),
            vmem_limit_bytes=vmem_limit,
        ),
        cost_estimate=pl.CostEstimate(
            flops=flops, transcendentals=0, bytes_accessed=bytes_accessed
        ),
    )(adj_i8, support, bias)


def pool_classify(pool_mat, h, wc, bc):
    """log_softmax((pool_mat @ h) @ wc + bc), fused reduction + f32 epilogue."""
    gp, np_ = pool_mat.shape
    hp = h.shape[1]
    cp = wc.shape[1]
    tk = _pick_tile(np_)
    flops = 2 * gp * np_ * hp + 2 * gp * hp * cp
    bytes_accessed = gp * np_ * 2 + np_ * hp * 2 + hp * cp * 4 + gp * cp * 4
    return pl.pallas_call(
        pool_head_kernel,
        out_shape=jax.ShapeDtypeStruct((gp, cp), jnp.float32),
        grid_spec=pltpu.PrefetchScalarGridSpec(
            num_scalar_prefetch=0,
            grid=(np_ // tk,),
            in_specs=[
                pl.BlockSpec((gp, tk), lambda k: (0, k)),
                pl.BlockSpec((tk, hp), lambda k: (k, 0)),
                pl.BlockSpec((hp, cp), lambda k: (0, 0)),
                pl.BlockSpec((1, cp), lambda k: (0, 0)),
            ],
            out_specs=pl.BlockSpec((gp, cp), lambda k: (0, 0)),
            scratch_shapes=[pltpu.VMEM((gp, hp), jnp.float32)],
        ),
        compiler_params=pltpu.CompilerParams(
            dimension_semantics=("arbitrary",),
        ),
        cost_estimate=pl.CostEstimate(
            flops=flops, transcendentals=gp * cp, bytes_accessed=bytes_accessed
        ),
    )(pool_mat, h, wc, bc)


# ------------------------------ full forward ----------------------------------


@functools.partial(jax.jit, static_argnames=("num_graphs",))
def gcn_adj_forward(x, adj, batch, num_graphs, params):
    """Full GCNadj forward (eval mode: dropout is identity)."""
    n, f = x.shape
    h = params["w1"].shape[1]
    c = params["wc"].shape[1]

    # Padded/lane-dense sizes. Node padding (256) is decoupled from the tile
    # size so bigger tiles never inflate the Np^2 adjacency.
    np_ = _round_up(n, _NODE_PAD)
    fp = _round_up(max(f, _LANE), _LANE)
    hp = _round_up(max(h, _LANE), _LANE)
    cp = _round_up(max(c, _LANE), _LANE)
    gp = _round_up(max(num_graphs, 16), 16)   # bf16 packs 16 sublanes per vreg

    # Padded operands. adj entries are exactly 0/1 -> store int8 in HBM (half
    # the dominant HBM stream), cast to bf16 inside the kernel. Activations and
    # weights feeding the MXU are bf16; biases / classifier epilogue stay f32.
    xp = _pad2(x, np_, fp).astype(jnp.bfloat16)
    adjp = _pad2(adj, np_, np_).astype(jnp.int8)
    w1p = _pad2(params["w1"], fp, hp).astype(jnp.bfloat16)
    w2p = _pad2(params["w2"], hp, hp).astype(jnp.bfloat16)
    b1p = _pad1(params["b1"], hp).reshape(1, hp).astype(jnp.float32)
    b2p = _pad1(params["b2"], hp).reshape(1, hp).astype(jnp.float32)
    wcp = _pad2(params["wc"], hp, cp).astype(jnp.float32)
    # Padded class columns get -1e9 so log-softmax ignores them.
    bcp = jnp.full((cp,), _NEG_INF, jnp.float32).at[:c].set(params["bc"]).reshape(1, cp)

    # Mean-pool matrix [G, N] (glue only; the matmul itself runs inside Pallas).
    one_hot = (batch[None, :] == jnp.arange(num_graphs)[:, None]).astype(jnp.float32)
    counts = jnp.maximum(one_hot.sum(axis=1, keepdims=True), 1.0)
    poolp = _pad2(one_hot / counts, gp, np_).astype(jnp.bfloat16)

    # Layer 1.
    s1 = support_matmul(xp, w1p)
    h1 = aggregate_relu(adjp, s1, b1p)
    # TODO(synk): F.dropout is identity at inference; training-mode dropout not implemented.

    # Layer 2.
    s2 = support_matmul(h1, w2p)
    h2 = aggregate_relu(adjp, s2, b2p)

    # Fused mean-pool + classifier + log-softmax.
    out = pool_classify(poolp, h2, wcp, bcp)
    return out[:num_graphs, :c]


# Pure-JAX f32 reference for validation.
def gcn_adj_reference(x, adj, batch, num_graphs, params):
    h1 = jax.nn.relu(adj @ (x @ params["w1"]) + params["b1"])
    h2 = jax.nn.relu(adj @ (h1 @ params["w2"]) + params["b2"])
    one_hot = (batch[None, :] == jnp.arange(num_graphs)[:, None]).astype(jnp.float32)
    counts = jnp.maximum(one_hot.sum(axis=1, keepdims=True), 1.0)
    pooled = (one_hot / counts) @ h2
    logits = pooled @ params["wc"] + params["bc"]
    return jax.nn.log_softmax(logits, axis=1)


# --------------------------------- main ---------------------------------------

if __name__ == "__main__":
    # Small synthetic shapes consistent with the module:
    N_NODES = 16      # total nodes over the batch of graphs
    N_FEAT = 8        # dataset.num_features
    HIDDEN = 32       # hidden
    N_CLASSES = 4     # dataset.num_classes
    N_GRAPHS = 2

    key = jax.random.PRNGKey(0)
    k_x, k_adj, k_w1, k_w2, k_wc = jax.random.split(key, 5)

    # Node features.
    x = jax.random.normal(k_x, (N_NODES, N_FEAT), dtype=jnp.float32)

    # Symmetric dense adjacency with self loops (what to_dense() of the COO tensor yields).
    a = (jax.random.uniform(k_adj, (N_NODES, N_NODES)) > 0.7).astype(jnp.float32)
    adj = jnp.maximum(a, a.T)
    adj = jnp.maximum(adj, jnp.eye(N_NODES, dtype=jnp.float32))

    # Graph assignment: first 8 nodes -> graph 0, last 8 -> graph 1.
    batch = jnp.concatenate(
        [jnp.zeros((8,), jnp.int32), jnp.ones((8,), jnp.int32)]
    )

    # Deterministic parameter init (GraphConvolution: weight [in, out], bias [out];
    # nn.Linear stored as [C, H] in torch, here materialized directly as [H, C]).
    params = {
        "w1": jax.random.normal(k_w1, (N_FEAT, HIDDEN), dtype=jnp.float32) * 0.1,
        "b1": jnp.zeros((HIDDEN,), dtype=jnp.float32),
        "w2": jax.random.normal(k_w2, (HIDDEN, HIDDEN), dtype=jnp.float32) * 0.1,
        "b2": jnp.zeros((HIDDEN,), dtype=jnp.float32),
        "wc": jax.random.normal(k_wc, (HIDDEN, N_CLASSES), dtype=jnp.float32) * 0.1,
        "bc": jnp.zeros((N_CLASSES,), dtype=jnp.float32),
    }

    out = gcn_adj_forward(x, adj, batch, N_GRAPHS, params)
    out = jax.block_until_ready(out)

    assert out.shape == (N_GRAPHS, N_CLASSES)
    # log_softmax rows should (approximately) sum to 1 in prob space.
    assert jnp.allclose(jnp.exp(out).sum(axis=1), 1.0, atol=1e-4)
    # Check against pure-JAX f32 reference (bf16 MXU inputs -> loose tolerance).
    ref = gcn_adj_reference(x, adj, batch, N_GRAPHS, params)
    assert jnp.allclose(out, ref, atol=5e-2, rtol=5e-2), (out, ref)

    print("KERNEL_OK")
</pallas_src>

<mosaic_0001>
module attributes {stable_mosaic.version = 11 : i64} {
  func.func @aggregate_kernel(%arg0: i32, %arg1: i32, %arg2: memref<256x256xi8, #tpu.memory_space<vmem>>, %arg3: memref<256x128xbf16, #tpu.memory_space<vmem>>, %arg4: memref<1x128xf32, #tpu.memory_space<vmem>>, %arg5: memref<256x128xbf16, #tpu.memory_space<vmem>>, %arg6: memref<256x128xf32, #tpu.memory_space<vmem>>) attributes {dimension_semantics = [#tpu.dimension_semantics<parallel>, #tpu.dimension_semantics<arbitrary>], iteration_bounds = array<i64: 1, 1>, scalar_prefetch = 0 : i64, scratch_operands = 1 : i64, tpu.core_type = #tpu.core_type<tc>, window_params = [{transform_indices = @transform_0, window_bounds = array<i64: 256, 256>}, {pipeline_mode = #tpu.pipeline_mode<synchronous>, transform_indices = @transform_1, window_bounds = array<i64: 256, 128>}, {pipeline_mode = #tpu.pipeline_mode<synchronous>, transform_indices = @transform_2, window_bounds = array<i64: 1, 128>}, {transform_indices = @transform_3, window_bounds = array<i64: 256, 128>}]} {
    %c0_i32 = arith.constant 0 : i32
    %0 = arith.cmpi eq, %arg1, %c0_i32 : i32
    %1 = arith.extui %0 : i1 to i32
    %c0_i32_0 = arith.constant 0 : i32
    %2 = arith.cmpi ne, %1, %c0_i32_0 : i32
    scf.if %2 {
      %cst_9 = arith.constant 0.000000e+00 : f32
      %16 = vector.broadcast %cst_9 : f32 to vector<256x128xf32>
      %c0_10 = arith.constant 0 : index
      %c0_11 = arith.constant 0 : index
      %17 = vector.load %arg6[%c0_10, %c0_11] : memref<256x128xf32, #tpu.memory_space<vmem>>, vector<256x128xf32>
      tpu.vector_store %arg6[%c0_10, %c0_11], %16 {strides = array<i32>} : memref<256x128xf32, #tpu.memory_space<vmem>>, vector<256x128xf32>,
    } else {
    }
    %c0 = arith.constant 0 : index
    %c0_1 = arith.constant 0 : index
    %3 = vector.load %arg2[%c0, %c0_1] : memref<256x256xi8, #tpu.memory_space<vmem>>, vector<256x256xi8>
    %4 = arith.sitofp %3 : vector<256x256xi8> to vector<256x256xbf16>
    %c256_i32 = arith.constant 256 : i32
    %5 = arith.muli %arg1, %c256_i32 : i32
    %6 = tpu.assume_multiple %5, 256 : i32
    %7 = arith.index_cast %6 : i32 to index
    %c0_2 = arith.constant 0 : index
    %8 = vector.load %arg3[%7, %c0_2] : memref<256x128xbf16, #tpu.memory_space<vmem>>, vector<256x128xbf16>
    %c0_3 = arith.constant 0 : index
    %c0_4 = arith.constant 0 : index
    %9 = vector.load %arg6[%c0_3, %c0_4] : memref<256x128xf32, #tpu.memory_space<vmem>>, vector<256x128xf32>
    %cst = arith.constant dense<0.000000e+00> : vector<256x128xf32>
    %10 = tpu.matmul %4, %8, %cst {dimension_numbers = #tpu.dot_dimension_numbers<[1], [0], [0], [1], [0, 0, 1, 1], [], []>} : vector<256x256xbf16>, vector<256x128xbf16>, vector<256x128xf32> -> vector<256x128xf32>
    %11 = arith.addf %9, %10 : vector<256x128xf32>
    %c0_5 = arith.constant 0 : index
    %c0_6 = arith.constant 0 : index
    %12 = vector.load %arg6[%c0_5, %c0_6] : memref<256x128xf32, #tpu.memory_space<vmem>>, vector<256x128xf32>
    tpu.vector_store %arg6[%c0_5, %c0_6], %11 {strides = array<i32>} : memref<256x128xf32, #tpu.memory_space<vmem>>, vector<256x128xf32>,
    %c0_i32_7 = arith.constant 0 : i32
    %13 = arith.cmpi eq, %arg1, %c0_i32_7 : i32
    %14 = arith.extui %13 : i1 to i32
    %c0_i32_8 = arith.constant 0 : i32
    %15 = arith.cmpi ne, %14, %c0_i32_8 : i32
    scf.if %15 {
      %c0_9 = arith.constant 0 : index
      %c0_10 = arith.constant 0 : index
      %16 = vector.load %arg6[%c0_9, %c0_10] : memref<256x128xf32, #tpu.memory_space<vmem>>, vector<256x128xf32>
      %c0_11 = arith.constant 0 : index
      %c0_12 = arith.constant 0 : index
      %17 = vector.load %arg4[%c0_11, %c0_12] : memref<1x128xf32, #tpu.memory_space<vmem>>, vector<1x128xf32>
      %18 = vector.broadcast %17 : vector<1x128xf32> to vector<256x128xf32>
      %19 = arith.addf %16, %18 : vector<256x128xf32>
      %cst_13 = arith.constant 0.000000e+00 : f32
      %20 = vector.broadcast %cst_13 : f32 to vector<256x128xf32>
      %21 = arith.maximumf %19, %20 : vector<256x128xf32>
      %22 = arith.truncf %21 : vector<256x128xf32> to vector<256x128xbf16>
      %c0_14 = arith.constant 0 : index
      %c0_15 = arith.constant 0 : index
      %23 = vector.load %arg5[%c0_14, %c0_15] : memref<256x128xbf16, #tpu.memory_space<vmem>>, vector<256x128xbf16>
      tpu.vector_store %arg5[%c0_14, %c0_15], %22 {strides = array<i32>} : memref<256x128xbf16, #tpu.memory_space<vmem>>, vector<256x128xbf16>,
    } else {
    }
    return
  }
  func.func @transform_0(%arg0: i32, %arg1: i32) -> (i32, i32) {
    %c0_i32 = arith.constant 0 : i32
    return %arg0, %arg1 : i32, i32
  }
  func.func @transform_1(%arg0: i32, %arg1: i32) -> (i32, i32) {
    %c0_i32 = arith.constant 0 : i32
    %c0_i32_0 = arith.constant 0 : i32
    %c0_i32_1 = arith.constant 0 : i32
    return %c0_i32, %c0_i32_0 : i32, i32
  }
  func.func @transform_2(%arg0: i32, %arg1: i32) -> (i32, i32) {
    %c0_i32 = arith.constant 0 : i32
    %c0_i32_0 = arith.constant 0 : i32
    %c0_i32_1 = arith.constant 0 : i32
    return %c0_i32, %c0_i32_0 : i32, i32
  }
  func.func @transform_3(%arg0: i32, %arg1: i32) -> (i32, i32) {
    %c0_i32 = arith.constant 0 : i32
    %c0_i32_0 = arith.constant 0 : i32
    return %arg0, %c0_i32 : i32, i32
  }
}

module attributes {stable_mosaic.version = 11 : i64} {
  func.func @support_kernel(%arg0: i32, %arg1: memref<256x128xbf16, #tpu.memory_space<vmem>>, %arg2: memref<128x128xbf16, #tpu.memory_space<vmem>>, %arg3: memref<256x128xbf16, #tpu.memory_space<vmem>>) attributes {dimension_semantics = [#tpu.dimension_semantics<parallel>], iteration_bounds = array<i64: 1>, scalar_prefetch = 0 : i64, scratch_operands = 0 : i64, tpu.core_type = #tpu.core_type<tc>, window_params = [{transform_indices = @transform_0, window_bounds = array<i64: 256, 128>}, {pipeline_mode = #tpu.pipeline_mode<synchronous>, transform_indices = @transform_1, window_bounds = array<i64: 128, 128>}, {transform_indices = @transform_2, window_bounds = array<i64: 256, 128>}]} {
    %c0 = arith.constant 0 : index
    %c0_0 = arith.constant 0 : index
    %0 = vector.load %arg1[%c0, %c0_0] : memref<256x128xbf16, #tpu.memory_space<vmem>>, vector<256x128xbf16>
    %c0_1 = arith.constant 0 : index
    %c0_2 = arith.constant 0 : index
    %1 = vector.load %arg2[%c0_1, %c0_2] : memref<128x128xbf16, #tpu.memory_space<vmem>>, vector<128x128xbf16>
    %cst = arith.constant dense<0.000000e+00> : vector<256x128xf32>
    %2 = tpu.matmul %0, %1, %cst {dimension_numbers = #tpu.dot_dimension_numbers<[1], [0], [0], [1], [0, 0, 1, 1], [], []>} : vector<256x128xbf16>, vector<128x128xbf16>, vector<256x128xf32> -> vector<256x128xf32>
    %3 = arith.truncf %2 : vector<256x128xf32> to vector<256x128xbf16>
    %c0_3 = arith.constant 0 : index
    %c0_4 = arith.constant 0 : index
    %4 = vector.load %arg3[%c0_3, %c0_4] : memref<256x128xbf16, #tpu.memory_space<vmem>>, vector<256x128xbf16>
    tpu.vector_store %arg3[%c0_3, %c0_4], %3 {strides = array<i32>} : memref<256x128xbf16, #tpu.memory_space<vmem>>, vector<256x128xbf16>,
    return
  }
  func.func @transform_0(%arg0: i32) -> (i32, i32) {
    %c0_i32 = arith.constant 0 : i32
    %c0_i32_0 = arith.constant 0 : i32
    return %arg0, %c0_i32 : i32, i32
  }
  func.func @transform_1(%arg0: i32) -> (i32, i32) {
    %c0_i32 = arith.constant 0 : i32
    %c0_i32_0 = arith.constant 0 : i32
    %c0_i32_1 = arith.constant 0 : i32
    return %c0_i32, %c0_i32_0 : i32, i32
  }
  func.func @transform_2(%arg0: i32) -> (i32, i32) {
    %c0_i32 = arith.constant 0 : i32
    %c0_i32_0 = arith.constant 0 : i32
    return %arg0, %c0_i32 : i32, i32
  }
}

module attributes {stable_mosaic.version = 11 : i64} {
  func.func @pool_head_kernel(%arg0: i32, %arg1: memref<16x256xbf16, #tpu.memory_space<vmem>>, %arg2: memref<256x128xbf16, #tpu.memory_space<vmem>>, %arg3: memref<128x128xf32, #tpu.memory_space<vmem>>, %arg4: memref<1x128xf32, #tpu.memory_space<vmem>>, %arg5: memref<16x128xf32, #tpu.memory_space<vmem>>, %arg6: memref<16x128xf32, #tpu.memory_space<vmem>>) attributes {dimension_semantics = [#tpu.dimension_semantics<arbitrary>], iteration_bounds = array<i64: 1>, scalar_prefetch = 0 : i64, scratch_operands = 1 : i64, tpu.core_type = #tpu.core_type<tc>, window_params = [{transform_indices = @transform_0, window_bounds = array<i64: 16, 256>}, {transform_indices = @transform_1, window_bounds = array<i64: 256, 128>}, {pipeline_mode = #tpu.pipeline_mode<synchronous>, transform_indices = @transform_2, window_bounds = array<i64: 128, 128>}, {pipeline_mode = #tpu.pipeline_mode<synchronous>, transform_indices = @transform_3, window_bounds = array<i64: 1, 128>}, {pipeline_mode = #tpu.pipeline_mode<synchronous>, transform_indices = @transform_4, window_bounds = array<i64: 16, 128>}]} {
    %c0_i32 = arith.constant 0 : i32
    %0 = arith.cmpi eq, %arg0, %c0_i32 : i32
    %1 = arith.extui %0 : i1 to i32
    %c0_i32_0 = arith.constant 0 : i32
    %2 = arith.cmpi ne, %1, %c0_i32_0 : i32
    scf.if %2 {
      %cst_10 = arith.constant 0.000000e+00 : f32
      %12 = vector.broadcast %cst_10 : f32 to vector<16x128xf32>
      %c0_11 = arith.constant 0 : index
      %c0_12 = arith.constant 0 : index
      %13 = vector.load %arg6[%c0_11, %c0_12] : memref<16x128xf32, #tpu.memory_space<vmem>>, vector<16x128xf32>
      tpu.vector_store %arg6[%c0_11, %c0_12], %12 {strides = array<i32>} : memref<16x128xf32, #tpu.memory_space<vmem>>, vector<16x128xf32>,
    } else {
    }
    %c0 = arith.constant 0 : index
    %c0_1 = arith.constant 0 : index
    %3 = vector.load %arg6[%c0, %c0_1] : memref<16x128xf32, #tpu.memory_space<vmem>>, vector<16x128xf32>
    %c0_2 = arith.constant 0 : index
    %c0_3 = arith.constant 0 : index
    %4 = vector.load %arg1[%c0_2, %c0_3] : memref<16x256xbf16, #tpu.memory_space<vmem>>, vector<16x256xbf16>
    %c0_4 = arith.constant 0 : index
    %c0_5 = arith.constant 0 : index
    %5 = vector.load %arg2[%c0_4, %c0_5] : memref<256x128xbf16, #tpu.memory_space<vmem>>, vector<256x128xbf16>
    %cst = arith.constant dense<0.000000e+00> : vector<16x128xf32>
    %6 = tpu.matmul %4, %5, %cst {dimension_numbers = #tpu.dot_dimension_numbers<[1], [0], [0], [1], [0, 0, 1, 1], [], []>} : vector<16x256xbf16>, vector<256x128xbf16>, vector<16x128xf32> -> vector<16x128xf32>
    %7 = arith.addf %3, %6 : vector<16x128xf32>
    %c0_6 = arith.constant 0 : index
    %c0_7 = arith.constant 0 : index
    %8 = vector.load %arg6[%c0_6, %c0_7] : memref<16x128xf32, #tpu.memory_space<vmem>>, vector<16x128xf32>
    tpu.vector_store %arg6[%c0_6, %c0_7], %7 {strides = array<i32>} : memref<16x128xf32, #tpu.memory_space<vmem>>, vector<16x128xf32>,
    %c0_i32_8 = arith.constant 0 : i32
    %9 = arith.cmpi eq, %arg0, %c0_i32_8 : i32
    %10 = arith.extui %9 : i1 to i32
    %c0_i32_9 = arith.constant 0 : i32
    %11 = arith.cmpi ne, %10, %c0_i32_9 : i32
    scf.if %11 {
      %c0_10 = arith.constant 0 : index
      %c0_11 = arith.constant 0 : index
      %12 = vector.load %arg6[%c0_10, %c0_11] : memref<16x128xf32, #tpu.memory_space<vmem>>, vector<16x128xf32>
      %c0_12 = arith.constant 0 : index
      %c0_13 = arith.constant 0 : index
      %13 = vector.load %arg3[%c0_12, %c0_13] : memref<128x128xf32, #tpu.memory_space<vmem>>, vector<128x128xf32>
      %cst_14 = arith.constant dense<0.000000e+00> : vector<16x128xf32>
      %14 = tpu.matmul %12, %13, %cst_14 {dimension_numbers = #tpu.dot_dimension_numbers<[1], [0], [0], [1], [0, 0, 1, 1], [], []>} : vector<16x128xf32>, vector<128x128xf32>, vector<16x128xf32> -> vector<16x128xf32>
      %c0_15 = arith.constant 0 : index
      %c0_16 = arith.constant 0 : index
      %15 = vector.load %arg4[%c0_15, %c0_16] : memref<1x128xf32, #tpu.memory_space<vmem>>, vector<1x128xf32>
      %16 = vector.broadcast %15 : vector<1x128xf32> to vector<16x128xf32>
      %17 = arith.addf %14, %16 : vector<16x128xf32>
      %cst_17 = arith.constant dense<0xFF800000> : vector<16xf32>
      %18 = vector.multi_reduction <maximumf>, %17, %cst_17 [1] : vector<16x128xf32> to vector<16xf32>
      %19 = vector.shape_cast %18 : vector<16xf32> to vector<16x1xf32>
      %20 = vector.broadcast %19 : vector<16x1xf32> to vector<16x128xf32>
      %21 = arith.subf %17, %20 : vector<16x128xf32>
      %22 = math.exp %21 : vector<16x128xf32>
      %cst_18 = arith.constant dense<0.000000e+00> : vector<16xf32>
      %23 = vector.multi_reduction <add>, %22, %cst_18 [1] : vector<16x128xf32> to vector<16xf32>
      %24 = vector.shape_cast %23 : vector<16xf32> to vector<16x1xf32>
      %25 = math.log %24 : vector<16x1xf32>
      %26 = vector.broadcast %25 : vector<16x1xf32> to vector<16x128xf32>
      %27 = arith.subf %21, %26 : vector<16x128xf32>
      %c0_19 = arith.constant 0 : index
      %c0_20 = arith.constant 0 : index
      %28 = vector.load %arg5[%c0_19, %c0_20] : memref<16x128xf32, #tpu.memory_space<vmem>>, vector<16x128xf32>
      tpu.vector_store %arg5[%c0_19, %c0_20], %27 {strides = array<i32>} : memref<16x128xf32, #tpu.memory_space<vmem>>, vector<16x128xf32>,
    } else {
    }
    return
  }
  func.func @transform_0(%arg0: i32) -> (i32, i32) {
    %c0_i32 = arith.constant 0 : i32
    %c0_i32_0 = arith.constant 0 : i32
    return %c0_i32, %arg0 : i32, i32
  }
  func.func @transform_1(%arg0: i32) -> (i32, i32) {
    %c0_i32 = arith.constant 0 : i32
    %c0_i32_0 = arith.constant 0 : i32
    return %arg0, %c0_i32 : i32, i32
  }
  func.func @transform_2(%arg0: i32) -> (i32, i32) {
    %c0_i32 = arith.constant 0 : i32
    %c0_i32_0 = arith.constant 0 : i32
    %c0_i32_1 = arith.constant 0 : i32
    return %c0_i32, %c0_i32_0 : i32, i32
  }
  func.func @transform_3(%arg0: i32) -> (i32, i32) {
    %c0_i32 = arith.constant 0 : i32
    %c0_i32_0 = arith.constant 0 : i32
    %c0_i32_1 = arith.constant 0 : i32
    return %c0_i32, %c0_i32_0 : i32, i32
  }
  func.func @transform_4(%arg0: i32) -> (i32, i32) {
    %c0_i32 = arith.constant 0 : i32
    %c0_i32_0 = arith.constant 0 : i32
    %c0_i32_1 = arith.constant 0 : i32
    return %c0_i32, %c0_i32_0 : i32, i32
  }
}

</mosaic_0001>

<bundles_post_ra>
// kernel: gcn_adj_forward.9
= control target key start
LH: loop header
LB: loop body
LE: loop exit
PB: predicated region body
PF: predicated region fallthrough
CT: control target
= control target key end

     0   :  { %s629_s1 = inlined_call_operand.vmem [shape: bf16[256,128], index: 1, kind: input, shape index: {}]   ;;  %s630_s0 = inlined_call_operand.vmem [shape: bf16[16,256], index: 0, kind: input, shape index: {}]   ;;  %s631_s2 = inlined_call_operand.vmem [shape: f32[128,128], index: 2, kind: input, shape index: {}]   ;;  %s632_s3 = inlined_call_operand.vmem [shape: f32[1,128], index: 3, kind: input, shape index: {}]   ;;  %s633_s4 = inlined_call_operand.vmem [shape: f32[16,128], index: 4, kind: output, shape index: {}]  }
   0x1   :  { %v466_v0 = vld [vmem:[%s629_s1 + $0x40] sm:$0xff]   ;;  %v468_v2 = vld [vmem:[%s629_s1 + $0x48] sm:$0xff]   ;;  %v470_v4 = vld [vmem:[%s629_s1 + $0x50] sm:$0xff]  }
   0x2   :  { %v467_v1 = vld [vmem:[%s629_s1] sm:$0xff]   ;;  %359 = vmatprep.subr.bf16.mxu0 %v466_v0  ;;  %v469_v3 = vld [vmem:[%s629_s1 + $0x8] sm:$0xff]   ;;  %v471_v5 = vld [vmem:[%s629_s1 + $0x10] sm:$0xff]  }
   0x3   :  { %360 = vmatpush3.bf16.msra.mxu0 %v467_v1  ;;  %v472_v6 = vld [vmem:[%s629_s1 + $0x58] sm:$0xff]   ;;  %v474_v8 = vld [vmem:[%s629_s1 + $0x60] sm:$0xff]   ;;  %v476_v10 = vld [vmem:[%s629_s1 + $0x68] sm:$0xff]  }
   0x4   :  { %361 = vmatprep.subr.bf16.mxu0 %v468_v2  ;;  %v473_v7 = vld [vmem:[%s629_s1 + $0x18] sm:$0xff]   ;;  %v475_v9 = vld [vmem:[%s629_s1 + $0x20] sm:$0xff]   ;;  %v217_v13 = vld [vmem:[%s631_s2 + $0x8] sm:$0xff] }
   0x5   :  { %v484_v11 = vld [vmem:[%s630_s0 + $0x4] ss:$8 sps:$4 sm:$0xff]   ;;  %v218_v15 = vld [vmem:[%s631_s2 + $0x10] sm:$0xff]  ;;  %v219_v16 = vld [vmem:[%s631_s2 + $0x18] sm:$0xff] }
   0x6   :  { %v216_v12 = vld [vmem:[%s631_s2] sm:$0xff]  ;;  %v477_v17 = vld [vmem:[%s629_s1 + $0x28] sm:$0xff]   ;;  %198 = vmatprep.mubr.bf16.mxu0 %v484_v11  ;;  %v438_v18 = vpack.c.bf16 %v219_v16, %v218_v15  ;;  %v478_v21 = vld [vmem:[%s629_s1 + $0x70] sm:$0xff]  }
   0x7   :  { %362 = vmatpush3.bf16.msra.mxu0 %v469_v3  ;;  %v434_v14 = vpack.c.bf16 %v217_v13, %v216_v12  ;;  %v220_v19 = vld [vmem:[%s631_s2 + $0x20] sm:$0xff]  ;;  %v221_v20 = vld [vmem:[%s631_s2 + $0x28] sm:$0xff]  ;;  %v479_v23 = vld [vmem:[%s629_s1 + $0x30] sm:$0xff]  }
   0x8   :  { %363 = vmatprep.subr.bf16.mxu0 %v470_v4  ;;  %v442_v22 = vpack.c.bf16 %v221_v20, %v220_v19  ;;  %v222_v24 = vld [vmem:[%s631_s2 + $0x30] sm:$0xff]  ;;  %v223_v25 = vld [vmem:[%s631_s2 + $0x38] sm:$0xff]  ;;  %v224_v29 = vld [vmem:[%s631_s2 + $0x40] sm:$0xff] }
   0x9   :  { %435 = vmatprep.subr.bf16.mxu1 %v434_v14  ;;  %v480_v26 = vld [vmem:[%s629_s1 + $0x78] sm:$0xff]   ;;  %v446_v27 = vpack.c.bf16 %v223_v25, %v222_v24  ;;  %v225_v30 = vld [vmem:[%s631_s2 + $0x48] sm:$0xff]  ;;  %v226_v33 = vld [vmem:[%s631_s2 + $0x50] sm:$0xff] }
   0xa   :  { %437 = vmatpush3.bf16.msra.mxu1 %v434_v14  ;;  %v481_v28 = vld [vmem:[%s629_s1 + $0x38] sm:$0xff]   ;;  %v482_v31 = vld [vmem:[%s630_s0] ss:$8 sps:$4 sm:$0xff]   ;;  %v450_v32 = vpack.c.bf16 %v225_v30, %v224_v29  ;;  %v230_v39 = vld [vmem:[%s631_s2 + $0x70] sm:$0xff] }
   0xb   :  { %364 = vmatpush3.bf16.msra.mxu0 %v471_v5  ;;  %439 = vmatprep.subr.bf16.mxu1 %v438_v18  ;;  %v227_v34 = vld [vmem:[%s631_s2 + $0x58] sm:$0xff]  ;;  %v228_v36 = vld [vmem:[%s631_s2 + $0x60] sm:$0xff]  ;;  %v229_v37 = vld [vmem:[%s631_s2 + $0x68] sm:$0xff] }
   0xc   :  { %365 = vmatprep.subr.bf16.mxu0 %v472_v6  ;;  %v454_v35 = vpack.c.bf16 %v227_v34, %v226_v33  ;;  %v458_v38 = vpack.c.bf16 %v229_v37, %v228_v36  ;;  %v231_v40 = vld [vmem:[%s631_s2 + $0x78] sm:$0xff]  ;;  %v358_v48 = vld [vmem:[%s632_s3] ss:$0 sm:$0xff] }
   0xd   :  { %v462_v41 = vpack.c.bf16 %v231_v40, %v230_v39 }
   0xe   :  { %441 = vmatpush3.bf16.msra.mxu1 %v438_v18 }
   0xf   :  { %366 = vmatpush3.bf16.msra.mxu0 %v473_v7  ;;  %443 = vmatprep.subr.bf16.mxu1 %v442_v22 }
  0x10   :  { %367 = vmatprep.subr.bf16.mxu0 %v474_v8 }
  0x12   :  { %445 = vmatpush3.bf16.msra.mxu1 %v442_v22 }
  0x13   :  { %368 = vmatpush3.bf16.msra.mxu0 %v475_v9  ;;  %447 = vmatprep.subr.bf16.mxu1 %v446_v27 }
  0x14   :  { %369 = vmatprep.subr.bf16.mxu0 %v476_v10 }
  0x16   :  { %449 = vmatpush3.bf16.msra.mxu1 %v446_v27 }
  0x17   :  { %370 = vmatpush3.bf16.msra.mxu0 %v477_v17  ;;  %451 = vmatprep.subr.bf16.mxu1 %v450_v32 }
  0x18   :  { %371 = vmatprep.subr.bf16.mxu0 %v478_v21 }
  0x1a   :  { %453 = vmatpush3.bf16.msra.mxu1 %v450_v32 }
  0x1b   :  { %372 = vmatpush3.bf16.msra.mxu0 %v479_v23  ;;  %455 = vmatprep.subr.bf16.mxu1 %v454_v35 }
  0x1c   :  { %373 = vmatprep.subr.bf16.mxu0 %v480_v26 }
  0x1e   :  { %457 = vmatpush3.bf16.msra.mxu1 %v454_v35 }
  0x1f   :  { %374 = vmatpush3.bf16.msra.mxu0 %v481_v28  ;;  %459 = vmatprep.subr.bf16.mxu1 %v458_v38 }
  0x22   :  { %199 = vmatmul.mubr.bf16.vlgmr.msra.gmra.mrb[0].mxu0 %v482_v31  ;;  %461 = vmatpush3.bf16.msra.mxu1 %v458_v38 }
  0x23   :  { %463 = vmatprep.subr.bf16.mxu1 %v462_v41 }
  0x26   :  { %465 = vmatpush3.bf16.msra.mxu1 %v462_v41 }
  0xf5   :  { %v375_v42 = vpop.f32.mrb[0].mxu0 }
  0xf6   :  { %v376_v43 = vpop.f32.mrb[1].mxu0 }
  0xf7   :  { %v378_v44 = vpop.f32.mrb[2].mxu0  ;;  %v377_v45 = vadd.f32 %v376_v43, %v375_v42 }
  0xf8   :  { %v379_v46 = vpop.f32.mrb[3].mxu0 }
  0xf9   :  { %v380_v47 = vadd.f32 %v379_v46, %v378_v44  ;;  %431 = vmatprep.mubr.f32.mxu1 %v377_v45 }
  0xfb   :  { %432 = vmatmul.mubr.f32.vlgmr.msra.gmra.mrb[0].mxu1 %v380_v47 }
 0x1ce   :  { %v433_v49 = vpop.f32.mrb[0].mxu1 }
 0x1cf   :  { %v305_v50 = vpop.f32.mrb[1].mxu1  ;;  %v311_v52 = vadd.f32 %v433_v49, %v358_v48 }
 0x1d0   :  { %v306_v51 = vadd.f32 %v358_v48, %v305_v50 }
 0x1d2   :  { %314 = vmax.xlane.f32.xlu0 %v306_v51 }
 0x1d6   :  { %316 = vmax.xlane.f32.xlu0 %v311_v52 }
 0x25f   :  { %v315_v53 = vpop.xlane.xlu0 %314 }
 0x260   :  { %v318_v54 = vsub.f32 %v306_v51, %v315_v53 }
 0x262   :  { %v320_v55 = vmul.f32 1.442695, %v318_v54 }
 0x263   :  { %v317_v56 = vpop.xlane.xlu0 %316 }
 0x264   :  { %v319_v57 = vsub.f32 %v311_v52, %v317_v56  ;;  %485 = vpow2.f32 %v320_v55 }
 0x266   :  { %v322_v58 = vmul.f32 1.442695, %v319_v57 }
 0x268   :  { %487 = vpow2.f32 %v322_v58 }
 0x26e   :  { %v486_v59 = vpop.eup %485 }
 0x26f   :  { %324 = vadd.xlane.f32.xlu1 %v486_v59 }
 0x272   :  { %v488_v60 = vpop.eup %487 }
 0x273   :  { %326 = vadd.xlane.f32.xlu1 %v488_v60 }
 0x2fc   :  { %v325_v61 = vpop.xlane.xlu1 %324 }
 0x2fd   :  { %489 = vlog2.f32 %v325_v61 }
 0x300   :  { %v327_v62 = vpop.xlane.xlu1 %326 }
 0x301   :  { %491 = vlog2.f32 %v327_v62 }
 0x307   :  { %v490_v63 = vpop.eup %489 }
 0x308   :  { %v329_v0 = vmul.f32 0.6931472, %v490_v63 }
 0x30a   :  { %v332_v1 = vsub.f32 %v318_v54, %v329_v0 }
 0x30b   :  { %v492_v2 = vpop.eup %491 }
 0x30c   :  { %334 = vst [vmem:[%s633_s4] sm:$0xff] %v332_v1  ;;  %v331_v3 = vmul.f32 0.6931472, %v492_v2 }
 0x30e   :  { %v333_v4 = vsub.f32 %v319_v57, %v331_v3 }
 0x310   :  { %335 = vst [vmem:[%s633_s4 + $0x8] sm:$0xff] %v333_v4 }

// kernel: gcn_adj_forward.5
= control target key start
LH: loop header
LB: loop body
LE: loop exit
PB: predicated region body
PF: predicated region fallthrough
CT: control target
= control target key end

     0   :  { %s959_s1 = inlined_call_operand.vmem [shape: bf16[128,128], index: 1, kind: input, shape index: {}]   ;;  %s960_s0 = inlined_call_operand.vmem [shape: bf16[256,128], index: 0, kind: input, shape index: {}]   ;;  %s961_s2 = inlined_call_operand.vmem [shape: bf16[256,128], index: 2, kind: output, shape index: {}]  }
   0x1   :  { %v800_v0 = vld [vmem:[%s959_s1] sm:$0xff]   ;;  %v801_v1 = vld [vmem:[%s959_s1 + $0x8] sm:$0xff]   ;;  %v802_v2 = vld [vmem:[%s959_s1 + $0x10] sm:$0xff]  }
   0x2   :  { %736 = vmatprep.subr.bf16.mxu0 %v800_v0  ;;  %784 = vmatprep.subr.bf16.mxu1 %v800_v0  ;;  %v803_v3 = vld [vmem:[%s959_s1 + $0x18] sm:$0xff]   ;;  %v808_v4 = vld [vmem:[%s960_s0] sm:$0xff]   ;;  %v805_v7 = vld [vmem:[%s959_s1 + $0x28] sm:$0xff]  }
   0x3   :  { %737 = vmatpush3.bf16.msra.mxu0 %v800_v0  ;;  %792 = vmatpush3.bf16.msra.mxu1 %v800_v0  ;;  %v809_v5 = vld [vmem:[%s960_s0 + $0x40] sm:$0xff]   ;;  %v806_v8 = vld [vmem:[%s959_s1 + $0x30] sm:$0xff]   ;;  %v807_v9 = vld [vmem:[%s959_s1 + $0x38] sm:$0xff]  }
   0x4   :  { %738 = vmatprep.subr.bf16.mxu0 %v801_v1  ;;  %785 = vmatprep.subr.bf16.mxu1 %v801_v1  ;;  %v804_v6 = vld [vmem:[%s959_s1 + $0x20] sm:$0xff]   ;;  %v810_v10 = vld [vmem:[%s960_s0 + $0x8] sm:$0xff]   ;;  %v812_v12 = vld [vmem:[%s960_s0 + $0x10] sm:$0xff]  }
   0x5   :  { %752 = vmatprep.mubr.bf16.mxu0 %v808_v4  ;;  %768 = vmatprep.mubr.bf16.mxu1 %v809_v5  ;;  %v811_v11 = vld [vmem:[%s960_s0 + $0x48] sm:$0xff]   ;;  %v813_v13 = vld [vmem:[%s960_s0 + $0x50] sm:$0xff]   ;;  %v814_v14 = vld [vmem:[%s960_s0 + $0x18] sm:$0xff]  }
   0x6   :  { %v815_v15 = vld [vmem:[%s960_s0 + $0x58] sm:$0xff]   ;;  %v816_v16 = vld [vmem:[%s960_s0 + $0x20] sm:$0xff]   ;;  %v818_v18 = vld [vmem:[%s960_s0 + $0x28] sm:$0xff]  }
   0x7   :  { %739 = vmatpush3.bf16.msra.mxu0 %v801_v1  ;;  %793 = vmatpush3.bf16.msra.mxu1 %v801_v1  ;;  %v817_v17 = vld [vmem:[%s960_s0 + $0x60] sm:$0xff]   ;;  %v819_v19 = vld [vmem:[%s960_s0 + $0x68] sm:$0xff]   ;;  %v820_v20 = vld [vmem:[%s960_s0 + $0x30] sm:$0xff]  }
   0x8   :  { %740 = vmatprep.subr.bf16.mxu0 %v802_v2  ;;  %786 = vmatprep.subr.bf16.mxu1 %v802_v2  ;;  %v821_v21 = vld [vmem:[%s960_s0 + $0x70] sm:$0xff]   ;;  %v822_v22 = vld [vmem:[%s960_s0 + $0x38] sm:$0xff]  }
   0x9   :  { %v823_v23 = vld [vmem:[%s960_s0 + $0x78] sm:$0xff]  }
   0xb   :  { %741 = vmatpush3.bf16.msra.mxu0 %v802_v2  ;;  %794 = vmatpush3.bf16.msra.mxu1 %v802_v2 }
   0xc   :  { %742 = vmatprep.subr.bf16.mxu0 %v803_v3  ;;  %787 = vmatprep.subr.bf16.mxu1 %v803_v3 }
   0xf   :  { %743 = vmatpush3.bf16.msra.mxu0 %v803_v3  ;;  %795 = vmatpush3.bf16.msra.mxu1 %v803_v3 }
  0x10   :  { %744 = vmatprep.subr.bf16.mxu0 %v804_v6  ;;  %788 = vmatprep.subr.bf16.mxu1 %v804_v6 }
  0x13   :  { %745 = vmatpush3.bf16.msra.mxu0 %v804_v6  ;;  %796 = vmatpush3.bf16.msra.mxu1 %v804_v6 }
  0x14   :  { %746 = vmatprep.subr.bf16.mxu0 %v805_v7  ;;  %789 = vmatprep.subr.bf16.mxu1 %v805_v7 }
  0x17   :  { %747 = vmatpush3.bf16.msra.mxu0 %v805_v7  ;;  %797 = vmatpush3.bf16.msra.mxu1 %v805_v7 }
  0x18   :  { %748 = vmatprep.subr.bf16.mxu0 %v806_v8  ;;  %790 = vmatprep.subr.bf16.mxu1 %v806_v8 }
  0x1b   :  { %749 = vmatpush3.bf16.msra.mxu0 %v806_v8  ;;  %798 = vmatpush3.bf16.msra.mxu1 %v806_v8 }
  0x1c   :  { %750 = vmatprep.subr.bf16.mxu0 %v807_v9  ;;  %791 = vmatprep.subr.bf16.mxu1 %v807_v9 }
  0x1f   :  { %751 = vmatpush3.bf16.msra.mxu0 %v807_v9  ;;  %799 = vmatpush3.bf16.msra.mxu1 %v807_v9 }
  0x22   :  { %753 = vmatmul.mubr.bf16.vlgmr.msra.gmra.mrb[0].mxu0 %v810_v10  ;;  %769 = vmatmul.mubr.bf16.vlgmr.msra.gmra.mrb[0].mxu1 %v811_v11 }
  0x23   :  { %756 = vmatprep.mubr.bf16.mxu0 %v812_v12  ;;  %772 = vmatprep.mubr.bf16.mxu1 %v813_v13 }
  0x2a   :  { %757 = vmatmul.mubr.bf16.gmra.mrb[4].mxu0 %v814_v14  ;;  %773 = vmatmul.mubr.bf16.gmra.mrb[4].mxu1 %v815_v15 }
  0x2b   :  { %760 = vmatprep.mubr.bf16.mxu0 %v816_v16  ;;  %776 = vmatprep.mubr.bf16.mxu1 %v817_v17 }
  0x32   :  { %761 = vmatmul.mubr.bf16.gmra.mrb[8].mxu0 %v818_v18  ;;  %777 = vmatmul.mubr.bf16.gmra.mrb[8].mxu1 %v819_v19 }
  0x33   :  { %764 = vmatprep.mubr.bf16.mxu0 %v820_v20  ;;  %780 = vmatprep.mubr.bf16.mxu1 %v821_v21 }
  0x3a   :  { %765 = vmatmul.mubr.bf16.gmra.mrb[12].mxu0 %v822_v22  ;;  %781 = vmatmul.mubr.bf16.gmra.mrb[12].mxu1 %v823_v23 }
  0xf5   :  { %v754_v24 = vpop.f32.mrb[0].mxu0  ;;  %v770_v25 = vpop.f32.mrb[0].mxu1 }
  0xf6   :  { %v238_v26 = vpop.f32.mrb[1].mxu0  ;;  %v302_v27 = vpop.f32.mrb[1].mxu1 }
  0xf7   :  { %v755_v28 = vpop.f32.mrb[2].mxu0  ;;  %v771_v29 = vpop.f32.mrb[2].mxu1 }
  0xf8   :  { %v625_v30 = vpack.c.bf16 %v755_v28, %v754_v24  ;;  %v665_v31 = vpack.c.bf16 %v771_v29, %v770_v25  ;;  %v241_v32 = vpop.f32.mrb[3].mxu0  ;;  %v305_v33 = vpop.f32.mrb[3].mxu1 }
  0xf9   :  { %v620_v34 = vpack.c.bf16 %v241_v32, %v238_v26  ;;  %v660_v35 = vpack.c.bf16 %v305_v33, %v302_v27 }
  0xfa   :  { %697 = vst [vmem:[%s961_s2 + $0x8] sm:$0xff] %v625_v30   ;;  %705 = vst [vmem:[%s961_s2 + $0x48] sm:$0xff] %v665_v31  }
  0xfb   :  { %621 = vst [vmem:[%s961_s2] sm:$0xff] %v620_v34   ;;  %704 = vst [vmem:[%s961_s2 + $0x40] sm:$0xff] %v660_v35  }
  0xfd   :  { %v758_v36 = vpop.f32.mrb[4].mxu0  ;;  %v774_v37 = vpop.f32.mrb[4].mxu1 }
  0xfe   :  { %v254_v38 = vpop.f32.mrb[5].mxu0  ;;  %v318_v39 = vpop.f32.mrb[5].mxu1 }
  0xff   :  { %v759_v40 = vpop.f32.mrb[6].mxu0  ;;  %v775_v41 = vpop.f32.mrb[6].mxu1 }
 0x100   :  { %v635_v42 = vpack.c.bf16 %v759_v40, %v758_v36  ;;  %v675_v43 = vpack.c.bf16 %v775_v41, %v774_v37  ;;  %v257_v44 = vpop.f32.mrb[7].mxu0  ;;  %v321_v45 = vpop.f32.mrb[7].mxu1 }
 0x101   :  { %v630_v46 = vpack.c.bf16 %v257_v44, %v254_v38  ;;  %v670_v47 = vpack.c.bf16 %v321_v45, %v318_v39 }
 0x102   :  { %699 = vst [vmem:[%s961_s2 + $0x18] sm:$0xff] %v635_v42   ;;  %707 = vst [vmem:[%s961_s2 + $0x58] sm:$0xff] %v675_v43  }
 0x103   :  { %698 = vst [vmem:[%s961_s2 + $0x10] sm:$0xff] %v630_v46   ;;  %706 = vst [vmem:[%s961_s2 + $0x50] sm:$0xff] %v670_v47  }
 0x105   :  { %v762_v48 = vpop.f32.mrb[8].mxu0  ;;  %v778_v49 = vpop.f32.mrb[8].mxu1 }
 0x106   :  { %v270_v50 = vpop.f32.mrb[9].mxu0  ;;  %v334_v51 = vpop.f32.mrb[9].mxu1 }
 0x107   :  { %v763_v52 = vpop.f32.mrb[10].mxu0  ;;  %v779_v53 = vpop.f32.mrb[10].mxu1 }
 0x108   :  { %v645_v54 = vpack.c.bf16 %v763_v52, %v762_v48  ;;  %v685_v55 = vpack.c.bf16 %v779_v53, %v778_v49  ;;  %v273_v56 = vpop.f32.mrb[11].mxu0  ;;  %v337_v57 = vpop.f32.mrb[11].mxu1 }
 0x109   :  { %v640_v58 = vpack.c.bf16 %v273_v56, %v270_v50  ;;  %v680_v59 = vpack.c.bf16 %v337_v57, %v334_v51 }
 0x10a   :  { %701 = vst [vmem:[%s961_s2 + $0x28] sm:$0xff] %v645_v54   ;;  %709 = vst [vmem:[%s961_s2 + $0x68] sm:$0xff] %v685_v55  }
 0x10b   :  { %700 = vst [vmem:[%s961_s2 + $0x20] sm:$0xff] %v640_v58   ;;  %708 = vst [vmem:[%s961_s2 + $0x60] sm:$0xff] %v680_v59  }
 0x10d   :  { %v766_v60 = vpop.f32.mrb[12].mxu0  ;;  %v782_v61 = vpop.f32.mrb[12].mxu1 }
 0x10e   :  { %v286_v62 = vpop.f32.mrb[13].mxu0  ;;  %v350_v63 = vpop.f32.mrb[13].mxu1 }
 0x10f   :  { %v767_v0 = vpop.f32.mrb[14].mxu0  ;;  %v783_v1 = vpop.f32.mrb[14].mxu1 }
 0x110   :  { %v655_v2 = vpack.c.bf16 %v767_v0, %v766_v60  ;;  %v695_v3 = vpack.c.bf16 %v783_v1, %v782_v61  ;;  %v289_v4 = vpop.f32.mrb[15].mxu0  ;;  %v353_v5 = vpop.f32.mrb[15].mxu1 }
 0x111   :  { %v650_v6 = vpack.c.bf16 %v289_v4, %v286_v62  ;;  %v690_v7 = vpack.c.bf16 %v353_v5, %v350_v63 }
 0x112   :  { %703 = vst [vmem:[%s961_s2 + $0x38] sm:$0xff] %v655_v2   ;;  %711 = vst [vmem:[%s961_s2 + $0x78] sm:$0xff] %v695_v3  }
 0x113   :  { %702 = vst [vmem:[%s961_s2 + $0x30] sm:$0xff] %v650_v6   ;;  %710 = vst [vmem:[%s961_s2 + $0x70] sm:$0xff] %v690_v7  }

// kernel: gcn_adj_forward.6
= control target key start
LH: loop header
LB: loop body
LE: loop exit
PB: predicated region body
PF: predicated region fallthrough
CT: control target
= control target key end

     0   :  { %s1282_s1 = inlined_call_operand.vmem [shape: bf16[256,128], index: 1, kind: input, shape index: {}]   ;;  %s1283_s0 = inlined_call_operand.vmem [shape: s8[256,256], index: 0, kind: input, shape index: {}]   ;;  %s1284_s2 = inlined_call_operand.vmem [shape: f32[1,128], index: 2, kind: input, shape index: {}]   ;;  %s1285_s3 = inlined_call_operand.vmem [shape: bf16[256,128], index: 3, kind: output, shape index: {}]  }
   0x1   :  { %v1065_v0 = vld [vmem:[%s1282_s1 + $0x40] sm:$0xff]   ;;  %v1067_v2 = vld [vmem:[%s1282_s1 + $0x48] sm:$0xff]   ;;  %v1069_v4 = vld [vmem:[%s1282_s1 + $0x50] sm:$0xff]  }
   0x2   :  { %v1066_v1 = vld [vmem:[%s1282_s1] sm:$0xff]   ;;  %937 = vmatprep.subr.bf16.mxu0 %v1065_v0  ;;  %1049 = vmatprep.subr.bf16.mxu1 %v1065_v0  ;;  %v1068_v3 = vld [vmem:[%s1282_s1 + $0x8] sm:$0xff]   ;;  %v1070_v5 = vld [vmem:[%s1282_s1 + $0x10] sm:$0xff]  }
   0x3   :  { %938 = vmatpush3.bf16.msra.mxu0 %v1066_v1  ;;  %1057 = vmatpush3.bf16.msra.mxu1 %v1066_v1  ;;  %v1071_v6 = vld [vmem:[%s1282_s1 + $0x58] sm:$0xff]   ;;  %v1073_v8 = vld [vmem:[%s1282_s1 + $0x60] sm:$0xff]   ;;  %v1075_v10 = vld [vmem:[%s1282_s1 + $0x68] sm:$0xff]  }
   0x4   :  { %939 = vmatprep.subr.bf16.mxu0 %v1067_v2  ;;  %1050 = vmatprep.subr.bf16.mxu1 %v1067_v2  ;;  %v1072_v7 = vld [vmem:[%s1282_s1 + $0x18] sm:$0xff]   ;;  %v1074_v9 = vld [vmem:[%s1282_s1 + $0x20] sm:$0xff]   ;;  %v52_v11 = vld [vmem:[%s1283_s0 + $0x8] sm:$0xff] }
   0x5   :  { %v60_v12 = vld [vmem:[%s1283_s0 + $0x48] sm:$0xff]  ;;  %v68_v13 = vunpack.c.l.s8.bf16 %v52_v11  ;;  %v1077_v16 = vld [vmem:[%s1282_s1 + $0x70] sm:$0xff]   ;;  %v1079_v18 = vld [vmem:[%s1282_s1 + $0x78] sm:$0xff]   ;;  %v70_v24 = vunpack.c.h.s8.bf16 %v52_v11 }
   0x6   :  { %v84_v14 = vunpack.c.l.s8.bf16 %v60_v12  ;;  %v1076_v15 = vld [vmem:[%s1282_s1 + $0x28] sm:$0xff]   ;;  %v1078_v17 = vld [vmem:[%s1282_s1 + $0x30] sm:$0xff]   ;;  %v1080_v19 = vld [vmem:[%s1282_s1 + $0x38] sm:$0xff]   ;;  %v86_v25 = vunpack.c.h.s8.bf16 %v60_v12 }
   0x7   :  { %940 = vmatpush3.bf16.msra.mxu0 %v1068_v3  ;;  %1058 = vmatpush3.bf16.msra.mxu1 %v1068_v3  ;;  %v51_v20 = vld [vmem:[%s1283_s0] sm:$0xff]  ;;  %v54_v26 = vld [vmem:[%s1283_s0 + $0x18] sm:$0xff]  ;;  %v53_v32 = vld [vmem:[%s1283_s0 + $0x10] sm:$0xff] }
   0x8   :  { %941 = vmatprep.subr.bf16.mxu0 %v1069_v4  ;;  %1051 = vmatprep.subr.bf16.mxu1 %v1069_v4  ;;  %v59_v21 = vld [vmem:[%s1283_s0 + $0x40] sm:$0xff]  ;;  %v67_v22 = vunpack.c.l.s8.bf16 %v51_v20  ;;  %v62_v27 = vld [vmem:[%s1283_s0 + $0x58] sm:$0xff]  ;;  %v69_v28 = vunpack.c.h.s8.bf16 %v51_v20  ;;  %v72_v30 = vunpack.c.l.s8.bf16 %v54_v26  ;;  %v61_v33 = vld [vmem:[%s1283_s0 + $0x50] sm:$0xff]  ;;  %v71_v34 = vunpack.c.l.s8.bf16 %v53_v32 }
   0x9   :  { %296 = vmatprep.mubr.bf16.mxu0 %v68_v13  ;;  %360 = vmatprep.mubr.bf16.mxu1 %v84_v14  ;;  %v83_v23 = vunpack.c.l.s8.bf16 %v59_v21  ;;  %v85_v29 = vunpack.c.h.s8.bf16 %v59_v21  ;;  %v88_v31 = vunpack.c.l.s8.bf16 %v62_v27  ;;  %v87_v35 = vunpack.c.l.s8.bf16 %v61_v33  ;;  %v56_v38 = vld [vmem:[%s1283_s0 + $0x28] sm:$0xff]  ;;  %v55_v44 = vld [vmem:[%s1283_s0 + $0x20] sm:$0xff]  ;;  %v58_v50 = vld [vmem:[%s1283_s0 + $0x38] sm:$0xff] }
   0xa   :  { %v74_v36 = vunpack.c.h.s8.bf16 %v54_v26  ;;  %v90_v37 = vunpack.c.h.s8.bf16 %v62_v27  ;;  %v64_v39 = vld [vmem:[%s1283_s0 + $0x68] sm:$0xff]  ;;  %v73_v40 = vunpack.c.h.s8.bf16 %v53_v32  ;;  %v89_v41 = vunpack.c.h.s8.bf16 %v61_v33  ;;  %v63_v45 = vld [vmem:[%s1283_s0 + $0x60] sm:$0xff]  ;;  %v66_v51 = vld [vmem:[%s1283_s0 + $0x78] sm:$0xff] }
   0xb   :  { %942 = vmatpush3.bf16.msra.mxu0 %v1070_v5  ;;  %1059 = vmatpush3.bf16.msra.mxu1 %v1070_v5  ;;  %v76_v42 = vunpack.c.l.s8.bf16 %v56_v38  ;;  %v92_v43 = vunpack.c.l.s8.bf16 %v64_v39  ;;  %v75_v46 = vunpack.c.l.s8.bf16 %v55_v44  ;;  %v91_v47 = vunpack.c.l.s8.bf16 %v63_v45  ;;  %v57_v56 = vld [vmem:[%s1283_s0 + $0x30] sm:$0xff]  ;;  %v1200_v3 = vld [vmem:[%s1284_s2] ss:$0 sm:$0xff] }
   0xc   :  { %943 = vmatprep.subr.bf16.mxu0 %v1071_v6  ;;  %1052 = vmatprep.subr.bf16.mxu1 %v1071_v6  ;;  %v78_v48 = vunpack.c.h.s8.bf16 %v56_v38  ;;  %v94_v49 = vunpack.c.h.s8.bf16 %v64_v39  ;;  %v77_v52 = vunpack.c.h.s8.bf16 %v55_v44  ;;  %v93_v53 = vunpack.c.h.s8.bf16 %v63_v45  ;;  %v65_v57 = vld [vmem:[%s1283_s0 + $0x70] sm:$0xff] }
   0xd   :  { %v80_v54 = vunpack.c.l.s8.bf16 %v58_v50  ;;  %v96_v55 = vunpack.c.l.s8.bf16 %v66_v51  ;;  %v79_v58 = vunpack.c.l.s8.bf16 %v57_v56  ;;  %v95_v59 = vunpack.c.l.s8.bf16 %v65_v57 }
   0xe   :  { %v82_v60 = vunpack.c.h.s8.bf16 %v58_v50  ;;  %v98_v61 = vunpack.c.h.s8.bf16 %v66_v51  ;;  %v81_v62 = vunpack.c.h.s8.bf16 %v57_v56  ;;  %v97_v63 = vunpack.c.h.s8.bf16 %v65_v57 }
   0xf   :  { %944 = vmatpush3.bf16.msra.mxu0 %v1072_v7  ;;  %1060 = vmatpush3.bf16.msra.mxu1 %v1072_v7 }
  0x10   :  { %945 = vmatprep.subr.bf16.mxu0 %v1073_v8  ;;  %1053 = vmatprep.subr.bf16.mxu1 %v1073_v8 }
  0x13   :  { %946 = vmatpush3.bf16.msra.mxu0 %v1074_v9  ;;  %1061 = vmatpush3.bf16.msra.mxu1 %v1074_v9 }
  0x14   :  { %947 = vmatprep.subr.bf16.mxu0 %v1075_v10  ;;  %1054 = vmatprep.subr.bf16.mxu1 %v1075_v10 }
  0x17   :  { %948 = vmatpush3.bf16.msra.mxu0 %v1076_v15  ;;  %1062 = vmatpush3.bf16.msra.mxu1 %v1076_v15 }
  0x18   :  { %949 = vmatprep.subr.bf16.mxu0 %v1077_v16  ;;  %1055 = vmatprep.subr.bf16.mxu1 %v1077_v16 }
  0x1b   :  { %950 = vmatpush3.bf16.msra.mxu0 %v1078_v17  ;;  %1063 = vmatpush3.bf16.msra.mxu1 %v1078_v17 }
  0x1c   :  { %951 = vmatprep.subr.bf16.mxu0 %v1079_v18  ;;  %1056 = vmatprep.subr.bf16.mxu1 %v1079_v18 }
  0x1f   :  { %952 = vmatpush3.bf16.msra.mxu0 %v1080_v19  ;;  %1064 = vmatpush3.bf16.msra.mxu1 %v1080_v19 }
  0x22   :  { %297 = vmatmul.mubr.bf16.vlgmr.msra.gmra.mrb[0].mxu0 %v67_v22  ;;  %361 = vmatmul.mubr.bf16.vlgmr.msra.gmra.mrb[0].mxu1 %v83_v23 }
  0x23   :  { %304 = vmatprep.mubr.bf16.mxu0 %v70_v24  ;;  %368 = vmatprep.mubr.bf16.mxu1 %v86_v25 }
  0x2a   :  { %305 = vmatmul.mubr.bf16.gmra.mrb[4].mxu0 %v69_v28  ;;  %369 = vmatmul.mubr.bf16.gmra.mrb[4].mxu1 %v85_v29 }
  0x2b   :  { %312 = vmatprep.mubr.bf16.mxu0 %v72_v30  ;;  %376 = vmatprep.mubr.bf16.mxu1 %v88_v31 }
  0x32   :  { %313 = vmatmul.mubr.bf16.gmra.mrb[8].mxu0 %v71_v34  ;;  %377 = vmatmul.mubr.bf16.gmra.mrb[8].mxu1 %v87_v35 }
  0x33   :  { %320 = vmatprep.mubr.bf16.mxu0 %v74_v36  ;;  %384 = vmatprep.mubr.bf16.mxu1 %v90_v37 }
  0x3a   :  { %321 = vmatmul.mubr.bf16.gmra.mrb[12].mxu0 %v73_v40  ;;  %385 = vmatmul.mubr.bf16.gmra.mrb[12].mxu1 %v89_v41 }
  0x3b   :  { %328 = vmatprep.mubr.bf16.mxu0 %v76_v42  ;;  %392 = vmatprep.mubr.bf16.mxu1 %v92_v43 }
  0x42   :  { %329 = vmatmul.mubr.bf16.gmra.mrb[16].mxu0 %v75_v46  ;;  %393 = vmatmul.mubr.bf16.gmra.mrb[16].mxu1 %v91_v47 }
  0x43   :  { %336 = vmatprep.mubr.bf16.mxu0 %v78_v48  ;;  %400 = vmatprep.mubr.bf16.mxu1 %v94_v49 }
  0x4a   :  { %337 = vmatmul.mubr.bf16.gmra.mrb[20].mxu0 %v77_v52  ;;  %401 = vmatmul.mubr.bf16.gmra.mrb[20].mxu1 %v93_v53 }
  0x4b   :  { %344 = vmatprep.mubr.bf16.mxu0 %v80_v54  ;;  %408 = vmatprep.mubr.bf16.mxu1 %v96_v55 }
  0x52   :  { %345 = vmatmul.mubr.bf16.gmra.mrb[24].mxu0 %v79_v58  ;;  %409 = vmatmul.mubr.bf16.gmra.mrb[24].mxu1 %v95_v59 }
  0x53   :  { %352 = vmatprep.mubr.bf16.mxu0 %v82_v60  ;;  %416 = vmatprep.mubr.bf16.mxu1 %v98_v61 }
  0x5a   :  { %353 = vmatmul.mubr.bf16.gmra.mrb[28].mxu0 %v81_v62  ;;  %417 = vmatmul.mubr.bf16.gmra.mrb[28].mxu1 %v97_v63 }
  0xf5   :  { %v953_v0 = vpop.f32.mrb[0].mxu0  ;;  %v1001_v1 = vpop.f32.mrb[0].mxu1 }
  0xf6   :  { %v954_v2 = vpop.f32.mrb[1].mxu0  ;;  %v1002_v4 = vpop.f32.mrb[1].mxu1 }
  0xf7   :  { %v955_v5 = vadd.f32 %v954_v2, %v953_v0  ;;  %v1003_v6 = vadd.f32 %v1002_v4, %v1001_v1  ;;  %v956_v7 = vpop.f32.mrb[2].mxu0  ;;  %v1004_v8 = vpop.f32.mrb[2].mxu1 }
  0xf8   :  { %v957_v9 = vpop.f32.mrb[3].mxu0  ;;  %v1005_v10 = vpop.f32.mrb[3].mxu1 }
  0xf9   :  { %v531_v11 = vadd.f32 %v955_v5, %v1200_v3  ;;  %v547_v12 = vadd.f32 %v1003_v6, %v1200_v3  ;;  %v958_v13 = vadd.f32 %v957_v9, %v956_v7  ;;  %v1006_v14 = vadd.f32 %v1005_v10, %v1004_v8 }
  0xfb   :  { %v532_v15 = vadd.f32 %v958_v13, %v1200_v3  ;;  %v548_v16 = vadd.f32 %v1006_v14, %v1200_v3  ;;  %v563_v17 = vmax.f32 %v531_v11, 0.0  ;;  %v579_v18 = vmax.f32 %v547_v12, 0.0 }
  0xfd   :  { %v564_v19 = vmax.f32 %v532_v15, 0.0  ;;  %v580_v20 = vmax.f32 %v548_v16, 0.0  ;;  %v959_v21 = vpop.f32.mrb[4].mxu0  ;;  %v1007_v22 = vpop.f32.mrb[4].mxu1 }
  0xfe   :  { %v960_v23 = vpop.f32.mrb[5].mxu0  ;;  %v1008_v24 = vpop.f32.mrb[5].mxu1 }
  0xff   :  { %v845_v25 = vpack.c.bf16 %v564_v19, %v563_v17  ;;  %v885_v26 = vpack.c.bf16 %v580_v20, %v579_v18  ;;  %v961_v27 = vadd.f32 %v960_v23, %v959_v21  ;;  %v1009_v28 = vadd.f32 %v1008_v24, %v1007_v22  ;;  %v962_v29 = vpop.f32.mrb[6].mxu0  ;;  %v1010_v30 = vpop.f32.mrb[6].mxu1 }
 0x100   :  { %v963_v31 = vpop.f32.mrb[7].mxu0  ;;  %v1011_v32 = vpop.f32.mrb[7].mxu1 }
 0x101   :  { %846 = vst [vmem:[%s1285_s3] sm:$0xff] %v845_v25   ;;  %929 = vst [vmem:[%s1285_s3 + $0x40] sm:$0xff] %v885_v26   ;;  %v533_v33 = vadd.f32 %v961_v27, %v1200_v3  ;;  %v549_v34 = vadd.f32 %v1009_v28, %v1200_v3  ;;  %v964_v35 = vadd.f32 %v963_v31, %v962_v29 }
 0x102   :  { %v1012_v36 = vadd.f32 %v1011_v32, %v1010_v30 }
 0x103   :  { %v534_v37 = vadd.f32 %v964_v35, %v1200_v3  ;;  %v565_v39 = vmax.f32 %v533_v33, 0.0  ;;  %v581_v40 = vmax.f32 %v549_v34, 0.0 }
 0x104   :  { %v550_v38 = vadd.f32 %v1012_v36, %v1200_v3 }
 0x105   :  { %v566_v41 = vmax.f32 %v534_v37, 0.0  ;;  %v965_v43 = vpop.f32.mrb[8].mxu0  ;;  %v1013_v44 = vpop.f32.mrb[8].mxu1 }
 0x106   :  { %v582_v42 = vmax.f32 %v550_v38, 0.0  ;;  %v966_v45 = vpop.f32.mrb[9].mxu0  ;;  %v1014_v46 = vpop.f32.mrb[9].mxu1 }
 0x107   :  { %v850_v47 = vpack.c.bf16 %v566_v41, %v565_v39  ;;  %v967_v49 = vadd.f32 %v966_v45, %v965_v43  ;;  %v1015_v50 = vadd.f32 %v1014_v46, %v1013_v44  ;;  %v968_v51 = vpop.f32.mrb[10].mxu0  ;;  %v1016_v52 = vpop.f32.mrb[10].mxu1 }
 0x108   :  { %v890_v48 = vpack.c.bf16 %v582_v42, %v581_v40  ;;  %v969_v53 = vpop.f32.mrb[11].mxu0  ;;  %v1017_v54 = vpop.f32.mrb[11].mxu1 }
 0x109   :  { %922 = vst [vmem:[%s1285_s3 + $0x8] sm:$0xff] %v850_v47   ;;  %v535_v55 = vadd.f32 %v967_v49, %v1200_v3  ;;  %v551_v56 = vadd.f32 %v1015_v50, %v1200_v3  ;;  %v970_v57 = vadd.f32 %v969_v53, %v968_v51  ;;  %v1018_v58 = vadd.f32 %v1017_v54, %v1016_v52 }
 0x10a   :  { %930 = vst [vmem:[%s1285_s3 + $0x48] sm:$0xff] %v890_v48  }
 0x10b   :  { %v536_v59 = vadd.f32 %v970_v57, %v1200_v3  ;;  %v552_v60 = vadd.f32 %v1018_v58, %v1200_v3  ;;  %v567_v61 = vmax.f32 %v535_v55, 0.0  ;;  %v583_v62 = vmax.f32 %v551_v56, 0.0 }
 0x10d   :  { %v568_v63 = vmax.f32 %v536_v59, 0.0  ;;  %v584_v0 = vmax.f32 %v552_v60, 0.0  ;;  %v971_v1 = vpop.f32.mrb[12].mxu0  ;;  %v1019_v2 = vpop.f32.mrb[12].mxu1 }
 0x10e   :  { %v972_v4 = vpop.f32.mrb[13].mxu0  ;;  %v1020_v5 = vpop.f32.mrb[13].mxu1 }
 0x10f   :  { %v855_v6 = vpack.c.bf16 %v568_v63, %v567_v61  ;;  %v895_v7 = vpack.c.bf16 %v584_v0, %v583_v62  ;;  %v973_v8 = vadd.f32 %v972_v4, %v971_v1  ;;  %v1021_v9 = vadd.f32 %v1020_v5, %v1019_v2  ;;  %v974_v10 = vpop.f32.mrb[14].mxu0  ;;  %v1022_v11 = vpop.f32.mrb[14].mxu1 }
 0x110   :  { %v975_v12 = vpop.f32.mrb[15].mxu0  ;;  %v1023_v13 = vpop.f32.mrb[15].mxu1 }
 0x111   :  { %923 = vst [vmem:[%s1285_s3 + $0x10] sm:$0xff] %v855_v6   ;;  %931 = vst [vmem:[%s1285_s3 + $0x50] sm:$0xff] %v895_v7   ;;  %v537_v14 = vadd.f32 %v973_v8, %v1200_v3  ;;  %v553_v15 = vadd.f32 %v1021_v9, %v1200_v3  ;;  %v976_v16 = vadd.f32 %v975_v12, %v974_v10 }
 0x112   :  { %v1024_v17 = vadd.f32 %v1023_v13, %v1022_v11 }
 0x113   :  { %v538_v18 = vadd.f32 %v976_v16, %v1200_v3  ;;  %v569_v20 = vmax.f32 %v537_v14, 0.0  ;;  %v585_v21 = vmax.f32 %v553_v15, 0.0 }
 0x114   :  { %v554_v19 = vadd.f32 %v1024_v17, %v1200_v3 }
 0x115   :  { %v570_v22 = vmax.f32 %v538_v18, 0.0  ;;  %v977_v24 = vpop.f32.mrb[16].mxu0  ;;  %v1025_v25 = vpop.f32.mrb[16].mxu1 }
 0x116   :  { %v586_v23 = vmax.f32 %v554_v19, 0.0  ;;  %v978_v26 = vpop.f32.mrb[17].mxu0  ;;  %v1026_v27 = vpop.f32.mrb[17].mxu1 }
 0x117   :  { %v860_v28 = vpack.c.bf16 %v570_v22, %v569_v20  ;;  %v979_v30 = vadd.f32 %v978_v26, %v977_v24  ;;  %v1027_v31 = vadd.f32 %v1026_v27, %v1025_v25  ;;  %v980_v32 = vpop.f32.mrb[18].mxu0  ;;  %v1028_v33 = vpop.f32.mrb[18].mxu1 }
 0x118   :  { %v900_v29 = vpack.c.bf16 %v586_v23, %v585_v21  ;;  %v981_v34 = vpop.f32.mrb[19].mxu0  ;;  %v1029_v35 = vpop.f32.mrb[19].mxu1 }
 0x119   :  { %924 = vst [vmem:[%s1285_s3 + $0x18] sm:$0xff] %v860_v28   ;;  %v539_v36 = vadd.f32 %v979_v30, %v1200_v3  ;;  %v555_v37 = vadd.f32 %v1027_v31, %v1200_v3  ;;  %v982_v38 = vadd.f32 %v981_v34, %v980_v32  ;;  %v1030_v39 = vadd.f32 %v1029_v35, %v1028_v33 }
 0x11a   :  { %932 = vst [vmem:[%s1285_s3 + $0x58] sm:$0xff] %v900_v29  }
 0x11b   :  { %v540_v40 = vadd.f32 %v982_v38, %v1200_v3  ;;  %v556_v41 = vadd.f32 %v1030_v39, %v1200_v3  ;;  %v571_v42 = vmax.f32 %v539_v36, 0.0  ;;  %v587_v43 = vmax.f32 %v555_v37, 0.0 }
 0x11d   :  { %v572_v44 = vmax.f32 %v540_v40, 0.0  ;;  %v588_v45 = vmax.f32 %v556_v41, 0.0  ;;  %v983_v46 = vpop.f32.mrb[20].mxu0  ;;  %v1031_v47 = vpop.f32.mrb[20].mxu1 }
 0x11e   :  { %v984_v48 = vpop.f32.mrb[21].mxu0  ;;  %v1032_v49 = vpop.f32.mrb[21].mxu1 }
 0x11f   :  { %v865_v50 = vpack.c.bf16 %v572_v44, %v571_v42  ;;  %v905_v51 = vpack.c.bf16 %v588_v45, %v587_v43  ;;  %v985_v52 = vadd.f32 %v984_v48, %v983_v46  ;;  %v1033_v53 = vadd.f32 %v1032_v49, %v1031_v47  ;;  %v986_v54 = vpop.f32.mrb[22].mxu0  ;;  %v1034_v55 = vpop.f32.mrb[22].mxu1 }
 0x120   :  { %v987_v56 = vpop.f32.mrb[23].mxu0  ;;  %v1035_v57 = vpop.f32.mrb[23].mxu1 }
 0x121   :  { %925 = vst [vmem:[%s1285_s3 + $0x20] sm:$0xff] %v865_v50   ;;  %933 = vst [vmem:[%s1285_s3 + $0x60] sm:$0xff] %v905_v51   ;;  %v541_v58 = vadd.f32 %v985_v52, %v1200_v3  ;;  %v557_v59 = vadd.f32 %v1033_v53, %v1200_v3  ;;  %v988_v60 = vadd.f32 %v987_v56, %v986_v54 }
 0x122   :  { %v1036_v61 = vadd.f32 %v1035_v57, %v1034_v55 }
 0x123   :  { %v542_v62 = vadd.f32 %v988_v60, %v1200_v3  ;;  %v573_v0 = vmax.f32 %v541_v58, 0.0  ;;  %v589_v1 = vmax.f32 %v557_v59, 0.0 }
 0x124   :  { %v558_v63 = vadd.f32 %v1036_v61, %v1200_v3 }
 0x125   :  { %v574_v2 = vmax.f32 %v542_v62, 0.0  ;;  %v989_v5 = vpop.f32.mrb[24].mxu0  ;;  %v1037_v6 = vpop.f32.mrb[24].mxu1 }
 0x126   :  { %v590_v4 = vmax.f32 %v558_v63, 0.0  ;;  %v990_v7 = vpop.f32.mrb[25].mxu0  ;;  %v1038_v8 = vpop.f32.mrb[25].mxu1 }
 0x127   :  { %v870_v9 = vpack.c.bf16 %v574_v2, %v573_v0  ;;  %v991_v11 = vadd.f32 %v990_v7, %v989_v5  ;;  %v1039_v12 = vadd.f32 %v1038_v8, %v1037_v6  ;;  %v992_v13 = vpop.f32.mrb[26].mxu0  ;;  %v1040_v14 = vpop.f32.mrb[26].mxu1 }
 0x128   :  { %v910_v10 = vpack.c.bf16 %v590_v4, %v589_v1  ;;  %v993_v15 = vpop.f32.mrb[27].mxu0  ;;  %v1041_v16 = vpop.f32.mrb[27].mxu1 }
 0x129   :  { %926 = vst [vmem:[%s1285_s3 + $0x28] sm:$0xff] %v870_v9   ;;  %v543_v17 = vadd.f32 %v991_v11, %v1200_v3  ;;  %v559_v18 = vadd.f32 %v1039_v12, %v1200_v3  ;;  %v994_v19 = vadd.f32 %v993_v15, %v992_v13  ;;  %v1042_v20 = vadd.f32 %v1041_v16, %v1040_v14 }
 0x12a   :  { %934 = vst [vmem:[%s1285_s3 + $0x68] sm:$0xff] %v910_v10  }
 0x12b   :  { %v544_v21 = vadd.f32 %v994_v19, %v1200_v3  ;;  %v560_v22 = vadd.f32 %v1042_v20, %v1200_v3  ;;  %v575_v23 = vmax.f32 %v543_v17, 0.0  ;;  %v591_v24 = vmax.f32 %v559_v18, 0.0 }
 0x12d   :  { %v576_v25 = vmax.f32 %v544_v21, 0.0  ;;  %v592_v26 = vmax.f32 %v560_v22, 0.0  ;;  %v995_v27 = vpop.f32.mrb[28].mxu0  ;;  %v1043_v28 = vpop.f32.mrb[28].mxu1 }
 0x12e   :  { %v996_v29 = vpop.f32.mrb[29].mxu0  ;;  %v1044_v30 = vpop.f32.mrb[29].mxu1 }
 0x12f   :  { %v875_v31 = vpack.c.bf16 %v576_v25, %v575_v23  ;;  %v915_v32 = vpack.c.bf16 %v592_v26, %v591_v24  ;;  %v997_v33 = vadd.f32 %v996_v29, %v995_v27  ;;  %v1045_v34 = vadd.f32 %v1044_v30, %v1043_v28  ;;  %v998_v35 = vpop.f32.mrb[30].mxu0  ;;  %v1046_v36 = vpop.f32.mrb[30].mxu1 }
 0x130   :  { %v999_v37 = vpop.f32.mrb[31].mxu0  ;;  %v1047_v38 = vpop.f32.mrb[31].mxu1 }
 0x131   :  { %927 = vst [vmem:[%s1285_s3 + $0x30] sm:$0xff] %v875_v31   ;;  %935 = vst [vmem:[%s1285_s3 + $0x70] sm:$0xff] %v915_v32   ;;  %v545_v39 = vadd.f32 %v997_v33, %v1200_v3  ;;  %v561_v40 = vadd.f32 %v1045_v34, %v1200_v3  ;;  %v1000_v41 = vadd.f32 %v999_v37, %v998_v35 }
 0x132   :  { %v1048_v42 = vadd.f32 %v1047_v38, %v1046_v36 }
 0x133   :  { %v546_v43 = vadd.f32 %v1000_v41, %v1200_v3  ;;  %v577_v45 = vmax.f32 %v545_v39, 0.0  ;;  %v593_v46 = vmax.f32 %v561_v40, 0.0 }
 0x134   :  { %v562_v44 = vadd.f32 %v1048_v42, %v1200_v3 }
 0x135   :  { %v578_v47 = vmax.f32 %v546_v43, 0.0 }
 0x136   :  { %v594_v48 = vmax.f32 %v562_v44, 0.0 }
 0x137   :  { %v880_v49 = vpack.c.bf16 %v578_v47, %v577_v45 }
 0x138   :  { %v920_v50 = vpack.c.bf16 %v594_v48, %v593_v46 }
 0x139   :  { %928 = vst [vmem:[%s1285_s3 + $0x38] sm:$0xff] %v880_v49  }
 0x13a   :  { %936 = vst [vmem:[%s1285_s3 + $0x78] sm:$0xff] %v920_v50  }

</bundles_post_ra>
